<compile_context>
chip_gen: v7x
topology: tpu7x:2x2x1
jax: 0.10.0
libtpu: 0.0.40
codegen_flags: <defaults>
</compile_context>

<pallas_src>
import jax
import jax.numpy as jnp
from jax.experimental import pallas as pl
from jax.experimental.pallas import tpu as pltpu


def _round_up(x, m):
    return (x + m - 1) // m * m


def _pick_tile_b(b):
    """Batch tile: big tiles for big batches (amortize per-step overhead),
    at least two tiles once B >= 32 so both v7x TensorCores get work, and the
    whole batch as one exact block for tiny B (block == full dim, so the
    (8,128) divisibility constraint does not apply)."""
    if b < 32:
        return b
    if b >= 2048:
        return 1024
    if b >= 1024:
        return 512
    return _round_up(pl.cdiv(b, 2), 8)      # exactly 2 sublane-aligned tiles


def _resident_spec(block_shape):
    """BlockSpec for an operand whose block never changes across the grid:
    single-buffered so the pipeline does not allocate a useless second copy."""
    try:
        return pl.BlockSpec(block_shape, lambda i: (0, 0),
                            pipeline_mode=pl.Buffered(1))
    except TypeError:  # older jax without pipeline_mode: fall back to default
        return pl.BlockSpec(block_shape, lambda i: (0, 0))


def _make_engine_kernel(n_inputs, single_dot):
    """Fused 2-layer MLP head (synthetic stand-in for the TRT engine).

    The f32 -> bf16 activation cast happens inside the kernel so the wrapper
    never rewrites activations in HBM.  When the concatenated feature width
    fits one MXU pass (<= 256) the inputs are concatenated in VMEM and layer 1
    runs as a single K=d_in dot; otherwise each input gets a partial dot into
    a shared f32 accumulator (concat fused as partial dots)."""

    def kernel(*refs):
        x_refs = refs[:n_inputs]
        n_w1 = 1 if single_dot else n_inputs
        w1_refs = refs[n_inputs:n_inputs + n_w1]
        b1_ref, w2_ref, b2_ref, o_ref = refs[n_inputs + n_w1:]

        if single_dot:
            if n_inputs == 1:
                x = x_refs[0][...].astype(jnp.bfloat16)
            else:
                x = jnp.concatenate(
                    [r[...].astype(jnp.bfloat16) for r in x_refs], axis=-1)
            h = jnp.dot(x, w1_refs[0][...], preferred_element_type=jnp.float32)
        else:
            h = jnp.dot(x_refs[0][...].astype(jnp.bfloat16), w1_refs[0][...],
                        preferred_element_type=jnp.float32)
            for i in range(1, n_inputs):
                h = h + jnp.dot(x_refs[i][...].astype(jnp.bfloat16),
                                w1_refs[i][...],
                                preferred_element_type=jnp.float32)

        # Elementwise epilogue stays f32 (no bf16 VPU/EUP on v5e).
        h = jax.nn.gelu(h + b1_ref[...], approximate=True)

        y = jnp.dot(h.astype(jnp.bfloat16), w2_ref[...],
                    preferred_element_type=jnp.float32)
        o_ref[...] = (y + b2_ref[...]).astype(o_ref.dtype)

    return kernel


class SyntheticEngine:
    """Deterministic stand-in for the TensorRT engine (small MLP pose head).
    Weights stored bf16 (native MXU operand dtype); biases stay f32."""

    def __init__(self, d_in, d_hidden, d_out, key):
        assert d_hidden % 128 == 0 and d_out % 128 == 0
        k1, k2 = jax.random.split(key)
        self.d_in, self.d_hidden, self.d_out = d_in, d_hidden, d_out
        self.w1 = (jax.random.normal(k1, (d_in, d_hidden), jnp.float32)
                   / jnp.sqrt(d_in)).astype(jnp.bfloat16)
        self.b1 = jnp.zeros((1, d_hidden), jnp.float32)
        self.w2 = (jax.random.normal(k2, (d_hidden, d_out), jnp.float32)
                   / jnp.sqrt(d_hidden)).astype(jnp.bfloat16)
        self.b2 = jnp.zeros((1, d_out), jnp.float32)


class InferenceWrapper:
    """JAX/Pallas analogue of mast3r.relpose.InferenceWrapper.

    forward(*args): the engine's inputs are consumed directly by the kernel;
    the output dtype follows args[0].dtype, matching the original
    `torch.empty(..., dtype=args[0].dtype)` semantics.
    """

    # TODO(synk): raw device-pointer binding / execute_async_v3 of an arbitrary
    # TensorRT engine cannot be expressed in Pallas; the engine graph here is a
    # synthetic 2-layer MLP head fused into a single kernel.

    def __init__(self, engine):
        self.engine = engine
        # Single jitted dispatch per (shape, dtype) signature: weight slicing,
        # tiling decisions and the pallas_call compile into one executable.
        self._fwd = jax.jit(self._forward)

    def __call__(self, *args):
        e = self.engine
        return self._fwd(args, e.w1, e.b1, e.w2, e.b2)

    def _forward(self, args, w1, b1, w2, b2):
        d_in, d_hidden = w1.shape
        d_out = w2.shape[1]
        out_dtype = args[0].dtype
        B = args[0].shape[0]
        feat = tuple(a.shape[1] for a in args)
        assert sum(feat) == d_in

        tile_b = _pick_tile_b(B)
        grid = (pl.cdiv(B, tile_b),)        # ragged last block: masked in/out DMA

        single_dot = d_in <= 256            # one full-depth MXU pass if it fits
        if single_dot:
            w1_ops = [w1]
            w1_specs = [_resident_spec((d_in, d_hidden))]
        else:
            w1_ops, off = [], 0
            for f in feat:
                w1_ops.append(jax.lax.slice(w1, (off, 0), (off + f, d_hidden)))
                off += f
            w1_specs = [_resident_spec((f, d_hidden)) for f in feat]

        # VMEM budget: double-buffered activation tiles, single-buffered
        # resident weights, plus the in-kernel f32 intermediates (h, gelu, y)
        # and the bf16 concat buffer.  Capped at 48 MiB (safe on v7x's 64 MiB).
        out_isz = jnp.dtype(out_dtype).itemsize
        act = sum(tile_b * f * a.dtype.itemsize for f, a in zip(feat, args))
        act += tile_b * d_out * out_isz
        wts = (d_in * d_hidden + d_hidden * d_out) * 2 + (d_hidden + d_out) * 4
        interm = tile_b * (d_in * 2 + 3 * d_hidden * 4 + d_out * 4)
        vmem_limit = int(min(max(2 * act + wts + interm + (8 << 20), 32 << 20),
                             48 << 20))

        in_specs = (
            [pl.BlockSpec((tile_b, f), lambda i: (i, 0)) for f in feat]   # x tiles
            + w1_specs                                                    # w1 (resident)
            + [_resident_spec((1, d_hidden)),                             # b1
               _resident_spec((d_hidden, d_out)),                         # w2 (resident)
               _resident_spec((1, d_out))]                                # b2
        )

        return pl.pallas_call(
            _make_engine_kernel(len(args), single_dot),
            out_shape=jax.ShapeDtypeStruct((B, d_out), out_dtype),
            grid=grid,
            in_specs=in_specs,
            out_specs=pl.BlockSpec((tile_b, d_out), lambda i: (i, 0)),
            compiler_params=pltpu.CompilerParams(
                dimension_semantics=("parallel",),
                vmem_limit_bytes=vmem_limit),
        )(*args, *w1_ops, b1, w2, b2)


def _reference(engine, *args):
    # Same bf16-rounded operands / f32 accumulation as the kernel.
    x = jnp.concatenate([a.astype(jnp.bfloat16) for a in args],
                        axis=-1).astype(jnp.float32)
    w1 = engine.w1.astype(jnp.float32)
    w2 = engine.w2.astype(jnp.float32)
    h = jax.nn.gelu(x @ w1 + engine.b1, approximate=True)
    y = h.astype(jnp.bfloat16).astype(jnp.float32) @ w2 + engine.b2
    return y.astype(args[0].dtype)


if __name__ == "__main__":
    key = jax.random.PRNGKey(0)
    k_in1, k_in2, k_eng = jax.random.split(key, 3)

    # B=50 exercises the optimized path: two "parallel" batch tiles of 32 rows
    # with a ragged (masked) last block — no HBM padding, no output slice.
    B, F = 50, 64
    D_IN, D_HID, D_OUT = 2 * F, 128, 128

    x1 = jax.random.normal(k_in1, (B, F), jnp.float32)
    x2 = jax.random.normal(k_in2, (B, F), jnp.float32)

    engine = SyntheticEngine(D_IN, D_HID, D_OUT, k_eng)
    wrapper = InferenceWrapper(engine)

    out = jax.block_until_ready(wrapper(x1, x2))
    ref = _reference(engine, x1, x2)

    assert out.shape == (B, D_OUT) and out.dtype == x1.dtype
    assert jnp.allclose(out, ref, atol=2e-2, rtol=2e-2)

    print("KERNEL_OK")
</pallas_src>

<mosaic_0001>
module attributes {stable_mosaic.version = 11 : i64} {
  func.func @kernel(%arg0: i32, %arg1: memref<32x64xf32, #tpu.memory_space<vmem>>, %arg2: memref<32x64xf32, #tpu.memory_space<vmem>>, %arg3: memref<128x128xbf16, #tpu.memory_space<vmem>>, %arg4: memref<1x128xf32, #tpu.memory_space<vmem>>, %arg5: memref<128x128xbf16, #tpu.memory_space<vmem>>, %arg6: memref<1x128xf32, #tpu.memory_space<vmem>>, %arg7: memref<32x128xf32, #tpu.memory_space<vmem>>) attributes {dimension_semantics = [#tpu.dimension_semantics<parallel>], iteration_bounds = array<i64: 2>, scalar_prefetch = 0 : i64, scratch_operands = 0 : i64, tpu.core_type = #tpu.core_type<tc>, window_params = [{transform_indices = @transform_0, window_bounds = array<i64: 32, 64>}, {transform_indices = @transform_1, window_bounds = array<i64: 32, 64>}, {pipeline_mode = #tpu.pipeline_mode<synchronous>, transform_indices = @transform_2, window_bounds = array<i64: 128, 128>}, {pipeline_mode = #tpu.pipeline_mode<synchronous>, transform_indices = @transform_3, window_bounds = array<i64: 1, 128>}, {pipeline_mode = #tpu.pipeline_mode<synchronous>, transform_indices = @transform_4, window_bounds = array<i64: 128, 128>}, {pipeline_mode = #tpu.pipeline_mode<synchronous>, transform_indices = @transform_5, window_bounds = array<i64: 1, 128>}, {transform_indices = @transform_6, window_bounds = array<i64: 32, 128>}]} {
    %c0 = arith.constant 0 : index
    %c0_0 = arith.constant 0 : index
    %0 = vector.load %arg1[%c0, %c0_0] : memref<32x64xf32, #tpu.memory_space<vmem>>, vector<32x64xf32>
    %1 = arith.truncf %0 : vector<32x64xf32> to vector<32x64xbf16>
    %c0_1 = arith.constant 0 : index
    %c0_2 = arith.constant 0 : index
    %2 = vector.load %arg2[%c0_1, %c0_2] : memref<32x64xf32, #tpu.memory_space<vmem>>, vector<32x64xf32>
    %3 = arith.truncf %2 : vector<32x64xf32> to vector<32x64xbf16>
    %4 = tpu.concatenate %1, %3 in 1 : vector<32x64xbf16>, vector<32x64xbf16> -> vector<32x128xbf16>
    %c0_3 = arith.constant 0 : index
    %c0_4 = arith.constant 0 : index
    %5 = vector.load %arg3[%c0_3, %c0_4] : memref<128x128xbf16, #tpu.memory_space<vmem>>, vector<128x128xbf16>
    %cst = arith.constant dense<0.000000e+00> : vector<32x128xf32>
    %6 = tpu.matmul %4, %5, %cst {dimension_numbers = #tpu.dot_dimension_numbers<[1], [0], [0], [1], [0, 0, 1, 1], [], []>} : vector<32x128xbf16>, vector<128x128xbf16>, vector<32x128xf32> -> vector<32x128xf32>
    %c0_5 = arith.constant 0 : index
    %c0_6 = arith.constant 0 : index
    %7 = vector.load %arg4[%c0_5, %c0_6] : memref<1x128xf32, #tpu.memory_space<vmem>>, vector<1x128xf32>
    %8 = vector.broadcast %7 : vector<1x128xf32> to vector<32x128xf32>
    %9 = arith.addf %6, %8 : vector<32x128xf32>
    %10 = arith.mulf %9, %9 : vector<32x128xf32>
    %11 = arith.mulf %9, %10 : vector<32x128xf32>
    %cst_7 = arith.constant 4.471500e-02 : f32
    %12 = vector.broadcast %cst_7 : f32 to vector<32x128xf32>
    %13 = arith.mulf %12, %11 : vector<32x128xf32>
    %14 = arith.addf %9, %13 : vector<32x128xf32>
    %cst_8 = arith.constant 0.797884583 : f32
    %15 = vector.broadcast %cst_8 : f32 to vector<32x128xf32>
    %16 = arith.mulf %15, %14 : vector<32x128xf32>
    %17 = math.tanh %16 : vector<32x128xf32>
    %cst_9 = arith.constant 1.000000e+00 : f32
    %18 = vector.broadcast %cst_9 : f32 to vector<32x128xf32>
    %19 = arith.addf %18, %17 : vector<32x128xf32>
    %cst_10 = arith.constant 5.000000e-01 : f32
    %20 = vector.broadcast %cst_10 : f32 to vector<32x128xf32>
    %21 = arith.mulf %20, %19 : vector<32x128xf32>
    %22 = arith.mulf %9, %21 : vector<32x128xf32>
    %23 = arith.truncf %22 : vector<32x128xf32> to vector<32x128xbf16>
    %c0_11 = arith.constant 0 : index
    %c0_12 = arith.constant 0 : index
    %24 = vector.load %arg5[%c0_11, %c0_12] : memref<128x128xbf16, #tpu.memory_space<vmem>>, vector<128x128xbf16>
    %cst_13 = arith.constant dense<0.000000e+00> : vector<32x128xf32>
    %25 = tpu.matmul %23, %24, %cst_13 {dimension_numbers = #tpu.dot_dimension_numbers<[1], [0], [0], [1], [0, 0, 1, 1], [], []>} : vector<32x128xbf16>, vector<128x128xbf16>, vector<32x128xf32> -> vector<32x128xf32>
    %c0_14 = arith.constant 0 : index
    %c0_15 = arith.constant 0 : index
    %26 = vector.load %arg6[%c0_14, %c0_15] : memref<1x128xf32, #tpu.memory_space<vmem>>, vector<1x128xf32>
    %27 = vector.broadcast %26 : vector<1x128xf32> to vector<32x128xf32>
    %28 = arith.addf %25, %27 : vector<32x128xf32>
    %c0_16 = arith.constant 0 : index
    %c0_17 = arith.constant 0 : index
    %29 = vector.load %arg7[%c0_16, %c0_17] : memref<32x128xf32, #tpu.memory_space<vmem>>, vector<32x128xf32>
    tpu.vector_store %arg7[%c0_16, %c0_17], %28 {strides = array<i32>} : memref<32x128xf32, #tpu.memory_space<vmem>>, vector<32x128xf32>,
    return
  }
  func.func @transform_0(%arg0: i32) -> (i32, i32) {
    %c0_i32 = arith.constant 0 : i32
    %c0_i32_0 = arith.constant 0 : i32
    return %arg0, %c0_i32 : i32, i32
  }
  func.func @transform_1(%arg0: i32) -> (i32, i32) {
    %c0_i32 = arith.constant 0 : i32
    %c0_i32_0 = arith.constant 0 : i32
    return %arg0, %c0_i32 : i32, i32
  }
  func.func @transform_2(%arg0: i32) -> (i32, i32) {
    %c0_i32 = arith.constant 0 : i32
    %c0_i32_0 = arith.constant 0 : i32
    %c0_i32_1 = arith.constant 0 : i32
    return %c0_i32, %c0_i32_0 : i32, i32
  }
  func.func @transform_3(%arg0: i32) -> (i32, i32) {
    %c0_i32 = arith.constant 0 : i32
    %c0_i32_0 = arith.constant 0 : i32
    %c0_i32_1 = arith.constant 0 : i32
    return %c0_i32, %c0_i32_0 : i32, i32
  }
  func.func @transform_4(%arg0: i32) -> (i32, i32) {
    %c0_i32 = arith.constant 0 : i32
    %c0_i32_0 = arith.constant 0 : i32
    %c0_i32_1 = arith.constant 0 : i32
    return %c0_i32, %c0_i32_0 : i32, i32
  }
  func.func @transform_5(%arg0: i32) -> (i32, i32) {
    %c0_i32 = arith.constant 0 : i32
    %c0_i32_0 = arith.constant 0 : i32
    %c0_i32_1 = arith.constant 0 : i32
    return %c0_i32, %c0_i32_0 : i32, i32
  }
  func.func @transform_6(%arg0: i32) -> (i32, i32) {
    %c0_i32 = arith.constant 0 : i32
    %c0_i32_0 = arith.constant 0 : i32
    return %arg0, %c0_i32 : i32, i32
  }
}

</mosaic_0001>

<bundles_post_ra>
// kernel: _forward.1
= control target key start
LH: loop header
LB: loop body
LE: loop exit
PB: predicated region body
PF: predicated region fallthrough
CT: control target
= control target key end

     0   :  { %11 = vsyncpa [#allocation3], 0  ;;  %s1577_s0 = inlined_call_operand.hbm [shape: f32[50,64], index: 0, kind: input, shape index: {}]   ;;  %s1578_s1 = inlined_call_operand.hbm [shape: f32[50,64], index: 1, kind: input, shape index: {}]   ;;  %s1579_s2 = inlined_call_operand.hbm [shape: bf16[128,128], index: 2, kind: input, shape index: {}]   ;;  %s1580_s3 = inlined_call_operand.vmem [shape: f32[1,128], index: 3, kind: input, shape index: {}]   ;;  %s1581_s4 = inlined_call_operand.hbm [shape: bf16[128,128], index: 4, kind: input, shape index: {}]   ;;  %s1582_s5 = inlined_call_operand.vmem [shape: f32[1,128], index: 5, kind: input, shape index: {}]   ;;  %s1583_s6 = inlined_call_operand.hbm [shape: f32[50,128], index: 6, kind: output, shape index: {}]  }
   0x1   :  { %13 = vsyncpa [#allocation3 + $0x1], 0 }
   0x2   :  { %14 = vsyncpa [#allocation6], 0 }
   0x3   :  { %16 = vsyncpa [#allocation6 + $0x1], 0 }
   0x4   :  { %17 = vsyncpa [#allocation9], 0 }
   0x5   :  { %18 = vsyncpa [#allocation4], 0 }
   0x6   :  { %20 = vsyncpa [#allocation4 + $0x1], 0  ;;  %s1261_s21 = smov 0   ;;  %s1263_s22 = smov 0  }
   0x7   :  { %s1265_s23 = smov 0   ;;  %s1267_s24 = smov 0  }
   0x8 LB: > { %s1282_s25 = sadd.s32 4294967295, %s1210_s24   ;;  %s811_s26 = sadd.s32 4294967294, %s1210_s24   ;;  %s1210_s24 = sphi %s1267_s24, %s1607_s24   ;;  %s1206_s23 = sphi %s1265_s23, %s1611_s23   ;;  %s1202_s22 = sphi %s1263_s22, %s1610_s22   ;;  %s1198_s21 = sphi %s1261_s21, %s1609_s21  }
   0x9   : > { %s1286_s27 = sadd.s32 1, %s1210_s24   ;;  %s33_s28 = sadd.s32 1, %s1206_s23 }
   0xa   : > { %1589 = sst [smem:[#allocation16_spill]] %s1286_s27  ;;  %s30_s29 = ssub.s32 %s1210_s24, %s1286_s27 }
   0xb   : > { %p40_p0 = scmp.ne.s32.totalorder %s1206_s23, %s1202_s22  ;;  %p31_p1 = scmp.eq.s32.totalorder %s30_s29, 0 }
   0xc   : > { %p41_p2 = scmp.eq.s32.totalorder %s1210_s24, 0  ;;  %p46_p3 = scmp.ne.s32.totalorder %s1202_s22, %s1198_s21 }
   0xd   : > { %p1584_p4 = scmp.eq.s32.totalorder %s1282_s25, 0  ;;  %p180_p7 = scmp.eq.s32.totalorder %s1282_s25, 1 }
   0xe   : > { %s1298_s30 = scalar_select %p31_p1, %s1206_s23, %s33_s28  }
   0xf   : > { %p1300_p5 = por %p41_p2, %p40_p0  ;;  %p1306_p6 = por %p1584_p4, %p46_p3 }
  0x10   : > { %1590 = sst [smem:[#allocation17_spill]] %s1298_s30  ;;  %p186_p8 = scmp.eq.s32.totalorder %s811_s26, 1 }
  0x11   : > { %s1591_s7 = scalar_select %p1300_p5, 1, 0 }
  0x12   : > { %s1592_s8 = scalar_select %p1306_p6, 1, 0 }
  0x13   : > { %p812_p9 = scmp.ge.s32.totalorder %s1210_s24, 1  ;;  %p193_p10 = scmp.lt.s32.totalorder %s1210_s24, 3 }
  0x14   : > { %p1313_p11 = por %p180_p7, %p40_p0  ;;  %p1317_p12 = por %p186_p8, %p46_p3 }
  0x15   : > { %p1321_p13 = pnand %p812_p9, %p193_p10  ;;  %s1212_s12 = smov [#allocation7]  }
  0x16   : > { %s1593_s9 = scalar_select %p1313_p11, 1, 0 }
  0x17   : > { %s1594_s10 = scalar_select %p1317_p12, 1, 0 }
  0x18   : > { %s1595_s11 = scalar_select %p1321_p13, 1, 0 }
  0x19   : > { %p937_p1 = pneg %p1321_p13  ;;  %s205_s13 = sshll.u32 %s1212_s12, 4  ;;  %s206_s13 = int_to_ptr.vmem [resolvable:$true] %s205_s13 }
  0x1a   : > { %s1213_s15 = smov [#allocation8]   ;;  %s1020_s19 = scalar_lea.hbm %s1579_s2, 1024 }
  0x1b   : > { %p1329_p2 = pnand %p937_p1, %p1584_p4  ;;  %s221_s16 = sshll.u32 %s1213_s15, 4  ;;  %s1333_s16 = int_to_ptr.vmem [resolvable:$true] %s221_s16 }
  0x1c   : > { %p1021_p0 = scmp.ne.s32.totalorder %s1579_s2, %s1020_s19  ;;  %p1027_p9 = scmp.lt.u32.totalorder %s1020_s19, %s1579_s2 }
  0x1d   : > { %p1022_p3 = pneg %p1329_p2 }
  0x1f   : > { %p1023_p7 = pnand %p1022_p3, %p1021_p0 }
  0x21   : > { %p1024_p8 = pneg %p1023_p7 }
  0x23   : > { %p1029_p10 = pnand %p1027_p9, %p1024_p8 }
  0x25   : > { %1032 = shalt.err (!%p1029_p10)
}
  0x26   : > { %s1033_s12 = scalar_lea.vmem %s206_s13, 1024  ;;  %p1041_p11 = scmp.lt.s32.totalorder %s206_s13, %s206_s13 }
  0x27   : > { %p1034_p1 = scmp.ne.s32.totalorder %s206_s13, %s1033_s12  ;;  %p1042_p6 = scmp.lt.s32.totalorder %s1033_s12, %s1033_s12 }
  0x29   : > { %p1036_p4 = pnand %p1034_p1, %p1022_p3  ;;  %p1043_p13 = por %p1042_p6, %p1041_p11 }
  0x2b   : > { %p1037_p12 = pneg %p1036_p4 }
  0x2d   : > { %p1044_p5 = pnand %p1043_p13, %p1037_p12 }
  0x2f   : > { %1047 = shalt.err (!%p1044_p5)
}
  0x30   : > { %s1214_s15 = smov 64   ;;  %s1215_s17 = smov 4  }
  0x31   : > { %940 = dma.hbm_to_vmem [thread:$0]  (!%p1329_p2), %s1579_s2, 1024, %s206_s13, [#allocation6], %s1214_s15, %s1214_s15, %s1215_s17  }
  0x32   : > { %s1048_s28 = scalar_lea.hbm %s1581_s4, 1024 }
  0x33   : > { %p1049_p4 = scmp.ne.s32.totalorder %s1581_s4, %s1048_s28  ;;  %p1055_p11 = scmp.lt.u32.totalorder %s1048_s28, %s1581_s4 }
  0x35   : > { %p1051_p5 = pnand %p1049_p4, %p1022_p3 }
  0x37   : > { %p1052_p6 = pneg %p1051_p5 }
  0x39   : > { %p1057_p12 = pnand %p1055_p11, %p1052_p6 }
  0x3b   : > { %1060 = shalt.err (!%p1057_p12)
}
  0x3c   : > { %s1061_s13 = scalar_lea.vmem %s1333_s16, 1024  ;;  %p1069_p8 = scmp.lt.s32.totalorder %s1333_s16, %s1333_s16 }
  0x3d   : > { %p1062_p13 = scmp.ne.s32.totalorder %s1333_s16, %s1061_s13  ;;  %p1070_p9 = scmp.lt.s32.totalorder %s1061_s13, %s1061_s13 }
  0x3f   : > { %p1064_p0 = pnand %p1062_p13, %p1022_p3  ;;  %p1071_p10 = por %p1070_p9, %p1069_p8 }
  0x41   : > { %p1065_p7 = pneg %p1064_p0 }
  0x43   : > { %p1072_p1 = pnand %p1071_p10, %p1065_p7 }
  0x45   : > { %1075 = shalt.err (!%p1072_p1)
}
  0x46   : > { %943 = dma.hbm_to_vmem [thread:$0]  (!%p1329_p2), %s1581_s4, 1024, %s1333_s16, [#allocation9], %s1214_s15, %s1214_s15, %s1215_s17  }
  0x47   : > { %p815_p4 = scmp.ge.s32.totalorder %s1210_s24, 2 }
  0x48   : > { %p1597_p3 = scmp.ne.s32.totalorder (!%p815_p4), %s1591_s7, 0 }
  0x49   : > { %234 = sbr.rel (%p815_p4) target bundleno = 152 (0x98), region = 32 }
  0x50   : > { %237 = sbr.rel (!%p1597_p3) target bundleno = 115 (0x73), region = 36  ;;  %s238_s18 = sand.u32 (%p1597_p3), 1, %s1206_s23  }
  0x51   : > { %s817_s19 = sshll.u32 (%p1597_p3), %s1210_s24, 2  ;;  %s816_s20 = sshll.u32 (%p1597_p3), %s238_s18, 5 }
  0x52   : > { %s244_s26 = ssub.s32 (%p1597_p3), 7, %s817_s19  ;;  %s1392_s15 = scalar_lea.sflag (%p1597_p3), [#allocation3], %s238_s18 }
  0x53   : > { %p245_p5 = scmp.lt.s32.totalorder (%p1597_p3), %s244_s26, 4  ;;  %s242_s17 = scalar_lea.vmem (%p1597_p3), [#allocation2], %s816_s20 }
  0x57   : > { %s1613_s26 = smov (!%p245_p5, %s244_s26), 4 }
  0x58   : > { %s1389_s14 = sshll.u32 %s1613_s26, 7 }
  0x59   : > { %s249_s16 = ssub.s32 512, %s1389_s14 }
  0x5a   : > { %250 = vsyncadd %s1392_s15, %s249_s16  ;;  %p819_p2 = scmp.ne.s32.totalorder %s1389_s14, 0  ;;  %s863_s28 = sshll.u32 %s1210_s24, 9 }
  0x5b   : > { %s1400_s13 = scalar_lea.hbm %s1577_s0, %s863_s28  ;;  %s255_s27 = sshll.u32 %s242_s17, 4  ;;  %s1402_s27 = int_to_ptr.vmem [resolvable:$true] %s255_s27 }
  0x5c   : > { %s1076_s30 = scalar_lea.hbm %s1400_s13, %s1389_s14  ;;  %s1080_s20 = scalar_lea.hbm %s1577_s0, 896 }
  0x5d   : > { %p1077_p6 = scmp.ne.s32.totalorder %s1400_s13, %s1076_s30  ;;  %p1081_p13 = scmp.lt.u32.totalorder %s1400_s13, %s1577_s0 }
  0x5e   : > { %p1082_p0 = scmp.lt.u32.totalorder %s1080_s20, %s1076_s30  ;;  %p1084_p8 = scmp.lt.u32.totalorder %s1076_s30, %s1400_s13 }
  0x5f   : > { %p1078_p11 = pnand %p1077_p6, %p819_p2 }
  0x60   : > { %p1083_p7 = por %p1082_p0, %p1081_p13 }
  0x61   : > { %p1079_p12 = pneg %p1078_p11 }
  0x62   : > { %p1085_p9 = por %p1084_p8, %p1083_p7 }
  0x64   : > { %p1086_p10 = pnand %p1085_p9, %p1079_p12 }
  0x66   : > { %1089 = shalt.err (!%p1086_p10)
}
  0x67   : > { %s1090_s17 = scalar_lea.vmem %s1402_s27, %s1389_s14  ;;  %s1216_s28 = smov [#allocation2]  }
  0x68   : > { %p1091_p1 = scmp.ne.s32.totalorder %s1402_s27, %s1090_s17  ;;  %s1094_s29 = sshll.u32 %s1216_s28, 4  ;;  %s1095_s29 = int_to_ptr.vmem [resolvable:$false] %s1094_s29 }
  0x69   : > { %s1096_s12 = scalar_lea.vmem %s1095_s29, 1024  ;;  %p1097_p6 = scmp.lt.s32.totalorder %s1402_s27, %s1095_s29 }
  0x6a   : > { %p1092_p3 = pnand %p1091_p1, %p819_p2  ;;  %p1098_p11 = scmp.lt.s32.totalorder %s1096_s12, %s1090_s17 }
  0x6c   : > { %p1093_p5 = pneg %p1092_p3  ;;  %p1099_p13 = por %p1098_p11, %p1097_p6 }
  0x6e   : > { %p1100_p0 = pnand %p1099_p13, %p1093_p5 }
  0x70   : > { %1103 = shalt.err (!%p1100_p0)
}
  0x71   : > { %s1217_s30 = smov 128   ;;  %s1218_s18 = smov 8  }
  0x72   : > { %261 = dma.hbm_to_vmem [thread:$0]  (%p819_p2), %s1400_s13, %s1389_s14, %s1402_s27, %s1392_s15, %s1217_s30, %s1217_s30, %s1218_s18  }
  0x73 PF: > { %p1598_p12 = scmp.ne.s32.totalorder %s1591_s7, 0 }
  0x74   : > { %s265_s19 = sand.u32 (%p1598_p12), 1, %s1210_s24   ;;  %s267_s20 = sand.u32 (%p1598_p12), 1, %s1206_s23  }
  0x75   : > { %264 = sbr.rel (!%p1598_p12) target bundleno = 152 (0x98), region = 40  ;;  %s823_s26 = sshll.u32 (%p1598_p12), %s267_s20, 5 }
  0x76   : > { %s824_s16 = sshll.u32 (%p1598_p12), %s1210_s24, 2  ;;  %s1437_s12 = scalar_lea.sflag (%p1598_p12), [#allocation6], %s265_s19 }
  0x77   : > { %s271_s17 = ssub.s32 (%p1598_p12), 7, %s824_s16  ;;  %s269_s14 = scalar_lea.vmem (%p1598_p12), [#allocation5], %s823_s26 }
  0x78   : > { %p272_p7 = scmp.lt.s32.totalorder (%p1598_p12), %s271_s17, 4 }
  0x7c   : > { %s1615_s17 = smov (!%p272_p7, %s271_s17), 4 }
  0x7d   : > { %s1434_s28 = sshll.u32 %s1615_s17, 7 }
  0x7e   : > { %s276_s29 = ssub.s32 512, %s1434_s28 }
  0x7f   : > { %277 = vsyncadd %s1437_s12, %s276_s29  ;;  %p826_p2 = scmp.ne.s32.totalorder %s1434_s28, 0  ;;  %s864_s7 = sshll.u32 %s1210_s24, 9 }
  0x80   : > { %s1445_s27 = scalar_lea.hbm %s1578_s1, %s864_s7  ;;  %s282_s30 = sshll.u32 %s269_s14, 4  ;;  %s1447_s30 = int_to_ptr.vmem [resolvable:$true] %s282_s30 }
  0x81   : > { %s1104_s18 = scalar_lea.hbm %s1445_s27, %s1434_s28  ;;  %s1108_s26 = scalar_lea.hbm %s1578_s1, 896 }
  0x82   : > { %p1105_p8 = scmp.ne.s32.totalorder %s1445_s27, %s1104_s18  ;;  %p1109_p1 = scmp.lt.u32.totalorder %s1445_s27, %s1578_s1 }
  0x83   : > { %p1110_p3 = scmp.lt.u32.totalorder %s1108_s26, %s1104_s18  ;;  %p1112_p6 = scmp.lt.u32.totalorder %s1104_s18, %s1445_s27 }
  0x84   : > { %p1106_p9 = pnand %p1105_p8, %p826_p2 }
  0x85   : > { %p1111_p5 = por %p1110_p3, %p1109_p1 }
  0x86   : > { %p1107_p10 = pneg %p1106_p9 }
  0x87   : > { %p1113_p11 = por %p1112_p6, %p1111_p5 }
  0x89   : > { %p1114_p13 = pnand %p1113_p11, %p1107_p10 }
  0x8b   : > { %1117 = shalt.err (!%p1114_p13)
}
  0x8c   : > { %s1118_s29 = scalar_lea.vmem %s1447_s30, %s1434_s28  ;;  %s1219_s14 = smov [#allocation5]  }
  0x8d   : > { %p1119_p0 = scmp.ne.s32.totalorder %s1447_s30, %s1118_s29  ;;  %s1122_s7 = sshll.u32 %s1219_s14, 4  ;;  %s1123_s7 = int_to_ptr.vmem [resolvable:$false] %s1122_s7 }
  0x8e   : > { %s1124_s15 = scalar_lea.vmem %s1123_s7, 1024  ;;  %p1125_p8 = scmp.lt.s32.totalorder %s1447_s30, %s1123_s7 }
  0x8f   : > { %p1120_p12 = pnand %p1119_p0, %p826_p2  ;;  %p1126_p9 = scmp.lt.s32.totalorder %s1124_s15, %s1118_s29 }
  0x91   : > { %p1121_p7 = pneg %p1120_p12  ;;  %p1127_p1 = por %p1126_p9, %p1125_p8 }
  0x93   : > { %p1128_p3 = pnand %p1127_p1, %p1121_p7 }
  0x95   : > { %1131 = shalt.err (!%p1128_p3)
}
  0x96   : > { %s1220_s13 = smov 128   ;;  %s1221_s18 = smov 8  }
  0x97   : > { %288 = dma.hbm_to_vmem [thread:$0]  (%p826_p2), %s1445_s27, %s1434_s28, %s1447_s30, %s1437_s12, %s1220_s13, %s1220_s13, %s1221_s18  }
  0x98 PF: > { %p1599_p10 = scmp.ne.s32.totalorder %s1595_s11, 0 }
  0x99   : > { %s1477_s19 = sand.u32 (!%p1599_p10), 1, %s1202_s22   ;;  %p1600_p5 = scmp.ne.s32.totalorder (!%p1599_p10), %s1592_s8, 0 }
  0x9a   : > { %294 = sbr.rel (%p1599_p10) target bundleno = 787 (0x313), region = 44  ;;  %s1480_s20 = sshll.u32 (!%p1599_p10), %s1477_s19, 5 }
  0x9b   : > { %s297_s26 = scalar_lea.sflag (!%p1599_p10), [#allocation3], %s1477_s19  ;;  %s1484_s16 = scalar_lea.vmem (!%p1599_p10), [#allocation2], %s1480_s20 }
  0xa1   : > { %1177 = dma.done.wait (%p1600_p5), %s297_s26, 512  }
  0xa2   : > { %1179 = vsyncadd (%p1600_p5), %s297_s26, 4294966784  ;;  %s305_s11 = sand.u32 1, %s1282_s25   ;;  %s309_s12 = scalar_lea.vmem [#allocation5], %s1480_s20 }
  0xa3   : > { %s306_s28 = scalar_lea.sflag [#allocation6], %s305_s11 }
  0xa4   : > { %1181 = dma.done.wait (%p1600_p5), %s306_s28, 512  }
  0xa5   : > { %1183 = vsyncadd (%p1600_p5), %s306_s28, 4294966784  ;;  %p1601_p2 = scmp.eq.s32.totalorder %s1282_s25, 0 }
  0xa7   : > { %1185 = dma.done.wait (%p1601_p2), [#allocation6], 1024   ;;  %p1602_p6 = pmov %p1601_p2 }
  0xa8   : > { %p1603_p11 = pmov %p1601_p2 }
  0xa9   : > { %1187 = vsyncadd (%p1602_p6), [#allocation6], 4294966272 }
  0xaa   : > { %1189 = dma.done.wait (%p1603_p11), [#allocation9], 1024   ;;  %p1604_p13 = pmov %p1601_p2 }
  0xab   : > { %v373_v0 = vld [vmem:[%s309_s12] sm:$0xff]  ;;  %v374_v1 = vld [vmem:[%s309_s12 + $0x8] sm:$0xff]  ;;  %v375_v2 = vld [vmem:[%s309_s12 + $0x10] sm:$0xff]  ;;  %s1222_s8 = smov 64   ;;  %vm385_vm0 = vcmask 523264   ;;  %s350_s14 = scalar_lea.vmem [#allocation10], %s1480_s20 }
  0xac   : > { %1191 = vsyncadd (%p1604_p13), [#allocation9], 4294966272  ;;  %v377_v3 = vpack.c.bf16 %v374_v1, %v373_v0  ;;  %v376_v4 = vld [vmem:[%s309_s12 + $0x18] sm:$0xff]  ;;  %v996_v5 = vld [vmem:[#allocation7] sm:$0xff]   ;;  %s677_s7 = scalar_lea.sflag [#allocation4], %s1477_s19  ;;  %p1605_p0 = scmp.ne.s32.totalorder %s1593_s9, 0 }
  0xad   : > { %v378_v6 = vpack.c.bf16 %v376_v4, %v375_v2  ;;  %v997_v7 = vld [vmem:[#allocation7 + $0x8] sm:$0xff]   ;;  %886 = vmatprep.subr.bf16.mxu0 %v996_v5  ;;  %v998_v8 = vld [vmem:[#allocation7 + $0x10] sm:$0xff]   ;;  %v999_v9 = vld [vmem:[#allocation7 + $0x18] sm:$0xff]   ;;  %s855_s15 = sshll.u32 (%p1605_p0), %s1282_s25, 2 }
  0xae   : > { %381 = vrot.lane.b32.xlu0 %v377_v3, %s1222_s8  ;;  %887 = vmatpush3.bf16.msra.mxu0 %v996_v5  ;;  %v1000_v10 = vld [vmem:[#allocation7 + $0x20] sm:$0xff]   ;;  %v1001_v11 = vld [vmem:[#allocation7 + $0x28] sm:$0xff]   ;;  %v1002_v12 = vld [vmem:[#allocation7 + $0x30] sm:$0xff]   ;;  %s685_s13 = ssub.s32 (%p1605_p0), 7, %s855_s15 }
  0xaf   : > { %888 = vmatprep.subr.bf16.mxu0 %v997_v7  ;;  %v1003_v13 = vld [vmem:[#allocation7 + $0x38] sm:$0xff]   ;;  %v367_v14 = vld [vmem:[%s1484_s16] sm:$0xff]  ;;  %v368_v15 = vld [vmem:[%s1484_s16 + $0x8] sm:$0xff]  ;;  %p686_p12 = scmp.lt.s32.totalorder (%p1605_p0), %s685_s13, 4 }
  0xb0   : > { %v371_v16 = vpack.c.bf16 %v368_v15, %v367_v14  ;;  %v369_v17 = vld [vmem:[%s1484_s16 + $0x10] sm:$0xff]  ;;  %v370_v18 = vld [vmem:[%s1484_s16 + $0x18] sm:$0xff]  ;;  %v1004_v24 = vld [vmem:[#allocation8] sm:$0xff]  }
  0xb1   : > { %v372_v21 = vpack.c.bf16 %v370_v18, %v369_v17  ;;  %906 = vmatprep.subr.bf16.mxu1 %v1004_v24  ;;  %v1005_v25 = vld [vmem:[#allocation8 + $0x8] sm:$0xff]   ;;  %v1006_v26 = vld [vmem:[#allocation8 + $0x10] sm:$0xff]   ;;  %v1007_v27 = vld [vmem:[#allocation8 + $0x18] sm:$0xff]  }
  0xb2   : > { %383 = vrot.lane.b32.xlu0 %v378_v6, %s1222_s8  ;;  %889 = vmatpush3.bf16.msra.mxu0 %v997_v7  ;;  %v1008_v28 = vld [vmem:[#allocation8 + $0x20] sm:$0xff]   ;;  %v1009_v29 = vld [vmem:[#allocation8 + $0x28] sm:$0xff]   ;;  %v1010_v30 = vld [vmem:[#allocation8 + $0x30] sm:$0xff]  }
  0xb3   : > { %890 = vmatprep.subr.bf16.mxu0 %v998_v8  ;;  %907 = vmatpush3.bf16.msra.mxu1 %v1004_v24  ;;  %v1011_v31 = vld [vmem:[#allocation8 + $0x38] sm:$0xff]   ;;  %v836_v32 = vld [vmem:[%s1580_s3] ss:$0 sm:$0xff] }
  0xb4   : > { %908 = vmatprep.subr.bf16.mxu1 %v1005_v25  ;;  %v845_v15 = vld [vmem:[%s1582_s5] ss:$0 sm:$0xff] }
  0xb6   : > { %891 = vmatpush3.bf16.msra.mxu0 %v998_v8 }
  0xb7   : > { %892 = vmatprep.subr.bf16.mxu0 %v999_v9  ;;  %909 = vmatpush3.bf16.msra.mxu1 %v1005_v25 }
  0xb8   : > { %910 = vmatprep.subr.bf16.mxu1 %v1006_v26 }
  0xba   : > { %893 = vmatpush3.bf16.msra.mxu0 %v999_v9 }
  0xbb   : > { %894 = vmatprep.subr.bf16.mxu0 %v1000_v10  ;;  %911 = vmatpush3.bf16.msra.mxu1 %v1006_v26 }
  0xbc   : > { %912 = vmatprep.subr.bf16.mxu1 %v1007_v27 }
  0xbe   : > { %895 = vmatpush3.bf16.msra.mxu0 %v1000_v10 }
  0xbf   : > { %896 = vmatprep.subr.bf16.mxu0 %v1001_v11  ;;  %913 = vmatpush3.bf16.msra.mxu1 %v1007_v27 }
  0xc0   : > { %914 = vmatprep.subr.bf16.mxu1 %v1008_v28 }
  0xc2   : > { %897 = vmatpush3.bf16.msra.mxu0 %v1001_v11 }
  0xc3   : > { %898 = vmatprep.subr.bf16.mxu0 %v1002_v12  ;;  %915 = vmatpush3.bf16.msra.mxu1 %v1008_v28 }
  0xc4   : > { %916 = vmatprep.subr.bf16.mxu1 %v1009_v29 }
  0xc6   : > { %899 = vmatpush3.bf16.msra.mxu0 %v1002_v12 }
  0xc7   : > { %900 = vmatprep.subr.bf16.mxu0 %v1003_v13  ;;  %917 = vmatpush3.bf16.msra.mxu1 %v1009_v29 }
  0xc8   : > { %918 = vmatprep.subr.bf16.mxu1 %v1010_v30 }
  0xca   : > { %901 = vmatpush3.bf16.msra.mxu0 %v1003_v13 }
  0xcb   : > { %919 = vmatpush3.bf16.msra.mxu1 %v1010_v30 }
  0xcc   : > { %920 = vmatprep.subr.bf16.mxu1 %v1011_v31 }
  0xcf   : > { %921 = vmatpush3.bf16.msra.mxu1 %v1011_v31 }
 0x120   : > { %v382_v19 = vpop.permute.xlu0 %381 }
 0x121   : > { %v388_v20 = vsel %vm385_vm0, %v371_v16, %v382_v19 }
 0x122   : > { %902 = vmatprep.mubr.bf16.mxu0 %v388_v20 }
 0x124   : > { %v384_v22 = vpop.permute.xlu0 %383 }
 0x125   : > { %v392_v23 = vsel %vm385_vm0, %v372_v21, %v384_v22 }
 0x126   : > { %903 = vmatmul.mubr.bf16.vlgmr.msra.gmra.mrb[0].mxu0 %v392_v23 }
 0x1f9   : > { %v904_v33 = vpop.f32.mrb[0].mxu0 }
 0x1fa   : > { %v508_v34 = vadd.f32 %v904_v33, %v836_v32  ;;  %v499_v35 = vpop.f32.mrb[1].mxu0 }
 0x1fb   : > { %v500_v36 = vadd.f32 %v836_v32, %v499_v35  ;;  %v905_v37 = vpop.f32.mrb[2].mxu0 }
 0x1fc   : > { %v516_v38 = vmul.f32 %v508_v34, %v508_v34  ;;  %v511_v39 = vadd.f32 %v905_v37, %v836_v32  ;;  %v502_v40 = vpop.f32.mrb[3].mxu0 }
 0x1fd   : > { %v514_v41 = vmul.f32 %v500_v36, %v500_v36  ;;  %v503_v42 = vadd.f32 %v836_v32, %v502_v40 }
 0x1fe   : > { %v520_v43 = vmul.f32 %v516_v38, %v508_v34  ;;  %v517_v44 = vmul.f32 %v511_v39, %v511_v39 }
 0x1ff   : > { %v518_v45 = vmul.f32 %v514_v41, %v500_v36  ;;  %v515_v46 = vmul.f32 %v503_v42, %v503_v42 }
 0x200   : > { %v524_v47 = vmul.f32 0.044715, %v520_v43  ;;  %v521_v48 = vmul.f32 %v517_v44, %v511_v39 }
 0x201   : > { %v522_v49 = vmul.f32 0.044715, %v518_v45  ;;  %v519_v50 = vmul.f32 %v515_v46, %v503_v42 }
 0x202   : > { %v528_v51 = vadd.f32 %v524_v47, %v508_v34  ;;  %v525_v52 = vmul.f32 0.044715, %v521_v48 }
 0x203   : > { %v523_v53 = vmul.f32 0.044715, %v519_v50  ;;  %v526_v54 = vadd.f32 %v522_v49, %v500_v36 }
 0x204   : > { %v532_v55 = vmul.f32 0.7978846, %v528_v51  ;;  %v529_v56 = vadd.f32 %v525_v52, %v511_v39 }
 0x205   : > { %v527_v57 = vadd.f32 %v523_v53, %v503_v42  ;;  %v530_v58 = vmul.f32 0.7978846, %v526_v54 }
 0x206   : > { %1012 = vtanh.f32 %v532_v55  ;;  %v533_v59 = vmul.f32 0.7978846, %v529_v56 }
 0x207   : > { %v531_v60 = vmul.f32 0.7978846, %v527_v57  ;;  %1014 = vtanh.f32 %v530_v58 }
 0x208   : > { %1016 = vtanh.f32 %v533_v59 }
 0x209   : > { %1018 = vtanh.f32 %v531_v60 }
 0x210   : > { %v1013_v61 = vpop.eup %1012 }
 0x211   : > { %v1015_v62 = vpop.eup %1014  ;;  %v540_v63 = vadd.f32 1.0, %v1013_v61 }
 0x212   : > { %v1017_v0 = vpop.eup %1016  ;;  %v538_v1 = vadd.f32 1.0, %v1015_v62 }
 0x213   : > { %v1019_v2 = vpop.eup %1018  ;;  %v541_v3 = vadd.f32 1.0, %v1017_v0  ;;  %v544_v4 = vmul.f32 0.5, %v540_v63 }
 0x214   : > { %v539_v5 = vadd.f32 1.0, %v1019_v2  ;;  %v542_v6 = vmul.f32 0.5, %v538_v1 }
 0x215   : > { %v545_v7 = vmul.f32 0.5, %v541_v3  ;;  %v548_v9 = vmul.f32 %v544_v4, %v508_v34 }
 0x216   : > { %v543_v8 = vmul.f32 0.5, %v539_v5  ;;  %v546_v11 = vmul.f32 %v542_v6, %v500_v36 }
 0x217   : > { %v549_v10 = vmul.f32 %v545_v7, %v511_v39 }
 0x218   : > { %v547_v12 = vmul.f32 %v543_v8, %v503_v42 }
 0x219   : > { %v551_v13 = vpack.c.bf16 %v549_v10, %v548_v9 }
 0x21a   : > { %v550_v14 = vpack.c.bf16 %v547_v12, %v546_v11 }
 0x21c   : > { %922 = vmatprep.mubr.bf16.mxu1 %v550_v14 }
 0x21d   : > { %923 = vmatmul.mubr.bf16.vlgmr.msra.gmra.mrb[0].mxu1 %v551_v13 }
 0x2f0   : > { %v924_v16 = vpop.f32.mrb[0].mxu1  ;;  %683 = sbr.rel (!%p1605_p0) target bundleno = 787 (0x313), region = 64 }
 0x2f1   : > { %v666_v17 = vadd.f32 %v924_v16, %v845_v15  ;;  %v657_v18 = vpop.f32.mrb[1].mxu1 }
 0x2f2   : > { %v658_v19 = vadd.f32 %v845_v15, %v657_v18  ;;  %v925_v20 = vpop.f32.mrb[2].mxu1 }
 0x2f3   : > { %674 = vst [vmem:[%s350_s14 + $0x10] sm:$0xff] %v666_v17  ;;  %v669_v21 = vadd.f32 %v925_v20, %v845_v15  ;;  %v660_v22 = vpop.f32.mrb[3].mxu1 }
 0x2f4   : > { %672 = vst [vmem:[%s350_s14] sm:$0xff] %v658_v19  ;;  %v661_v23 = vadd.f32 %v845_v15, %v660_v22 }
 0x2f5   : > { %675 = vst [vmem:[%s350_s14 + $0x18] sm:$0xff] %v669_v21 }
 0x2f6   : > { %673 = vst [vmem:[%s350_s14 + $0x8] sm:$0xff] %v661_v23 }
 0x2f7   : > { %s1617_s13 = smov (!%p686_p12, %s685_s13), 4 }
 0x2f8   : > { %s1519_s18 = sshll.u32 %s1617_s13, 7 }
 0x2f9   : > { %s690_s20 = ssub.s32 512, %s1519_s18 }
 0x2fa   : > { %691 = vsyncadd %s677_s7, %s690_s20  ;;  %p857_p7 = scmp.ne.s32.totalorder %s1519_s18, 0  ;;  %s865_s26 = sshll.u32 %s1282_s25, 9 }
 0x2fb   : > { %s1529_s11 = scalar_lea.hbm %s1583_s6, %s865_s26  ;;  %s696_s28 = sshll.u32 %s350_s14, 4  ;;  %s1531_s28 = int_to_ptr.vmem [resolvable:$true] %s696_s28 }
 0x2fc   : > { %s1132_s12 = scalar_lea.vmem %s1531_s28, %s1519_s18  ;;  %s1223_s8 = smov [#allocation10]  }
 0x2fd   : > { %p1133_p8 = scmp.ne.s32.totalorder %s1531_s28, %s1132_s12  ;;  %s1136_s27 = sshll.u32 %s1223_s8, 4  ;;  %s1137_s27 = int_to_ptr.vmem [resolvable:$false] %s1136_s27 }
 0x2fe   : > { %s1138_s25 = scalar_lea.vmem %s1137_s27, 1024  ;;  %p1139_p3 = scmp.lt.s32.totalorder %s1531_s28, %s1137_s27 }
 0x2ff   : > { %p1134_p9 = pnand %p1133_p8, %p857_p7  ;;  %p1140_p10 = scmp.lt.s32.totalorder %s1138_s25, %s1132_s12 }
 0x301   : > { %p1135_p1 = pneg %p1134_p9  ;;  %p1141_p5 = por %p1140_p10, %p1139_p3 }
 0x303   : > { %p1142_p2 = pnand %p1141_p5, %p1135_p1 }
 0x305   : > { %1145 = shalt.err (!%p1142_p2)
}
 0x306   : > { %s1146_s30 = scalar_lea.hbm %s1529_s11, %s1519_s18  ;;  %s1150_s14 = scalar_lea.hbm %s1583_s6, 896 }
 0x307   : > { %p1147_p6 = scmp.ne.s32.totalorder %s1529_s11, %s1146_s30  ;;  %p1151_p0 = scmp.lt.u32.totalorder %s1529_s11, %s1583_s6 }
 0x308   : > { %p1152_p12 = scmp.lt.u32.totalorder %s1150_s14, %s1146_s30  ;;  %p1154_p9 = scmp.lt.u32.totalorder %s1146_s30, %s1529_s11 }
 0x309   : > { %p1148_p11 = pnand %p1147_p6, %p857_p7 }
 0x30a   : > { %p1153_p8 = por %p1152_p12, %p1151_p0 }
 0x30b   : > { %p1149_p13 = pneg %p1148_p11 }
 0x30c   : > { %p1155_p1 = por %p1154_p9, %p1153_p8 }
 0x30e   : > { %p1156_p3 = pnand %p1155_p1, %p1149_p13 }
 0x310   : > { %1159 = shalt.err (!%p1156_p3)
}
 0x311   : > { %s1224_s20 = smov 128   ;;  %s1225_s26 = smov 8  }
 0x312   : > { %702 = dma.vmem_to_hbm [thread:$0]  (%p857_p7), %s1531_s28, %s1519_s18, %s1529_s11, %s677_s7, %s1224_s20, %s1224_s20, %s1225_s26  }
 0x313 PF: > { %s711_s9 = sand.u32 1, %s1198_s21   ;;  %p1606_p10 = scmp.ne.s32.totalorder %s1594_s10, 0 }
 0x314   : > { %s712_s16 = scalar_lea.sflag [#allocation4], %s711_s9 }
 0x315   : > { %p945_p5 = pnand %p815_p4, %p1606_p10 }
 0x317   : > { %1193 = dma.done.wait (!%p945_p5), %s712_s16, 512  }
 0x318   : > { %1195 = vsyncadd (!%p945_p5), %s712_s16, 4294966784  ;;  %s1607_s24 = sld [smem:[#allocation16_spill]]  ;;  %s1608_s12 = sld [smem:[#allocation17_spill]] }
 0x319   : > { %s1609_s21 = smov %s1202_s22  ;;  %s1610_s22 = smov %s1206_s23 }
 0x31e   : > { %p23_p2 = scmp.ge.s32.totalorder %s1607_s24, 4   ;;  %s1611_s23 = smov %s1608_s12 }
 0x320   :  { %25 = sbr.rel (!%p23_p2) target bundleno = 8 (0x8), region = 110 }
 0x327   :  { %717 = vsyncpa [#allocation3], 1 }
 0x328   :  { %719 = vsyncpa [#allocation3 + $0x1], 1 }
 0x329   :  { %720 = vsyncpa [#allocation6], 1 }
 0x32a   :  { %722 = vsyncpa [#allocation6 + $0x1], 1 }
 0x32b   :  { %723 = vsyncpa [#allocation9], 1 }
 0x32c   :  { %724 = vsyncpa [#allocation4], 1 }
 0x32d   :  { %726 = vsyncpa [#allocation4 + $0x1], 1 }

</bundles_post_ra>
